<compile_context>
chip_gen: v5e
topology: v5e:2x2
jax: 0.10.0
libtpu: 0.0.40
codegen_flags: <defaults>
</compile_context>

<pallas_src>
import jax
import jax.numpy as jnp
from jax.experimental import pallas as pl
from jax.experimental.pallas import tpu as pltpu

_LANE = 128
_MAX_TILE_ROWS = 1024  # rows of 128 lanes; 4 f32 buffers ~= 2 MiB, safe on v5e/v6e/v7x


def gaussian_membership_kernel(x_ref, a_ref, b_ref, o_ref):
    # Elementwise compute on VPU + EUP, parameters broadcast across rows.
    x = x_ref[...].astype(jnp.float32)            # (tile_rows, W)
    a = a_ref[...].astype(jnp.float32)            # (1, W)
    b = b_ref[...].astype(jnp.float32)            # (1, W)

    b_c = jnp.maximum(b, jnp.float32(1e-8))       # clamp(min=1e-8)
    # Hoisted per-column scale: exact divide on a single (1, W) row.
    scale = jnp.float32(-0.5) / (b_c * b_c)       # -1 / (2 * b^2)

    diff = x - a
    o_ref[...] = jnp.exp(diff * diff * scale).astype(o_ref.dtype)


def _gm_call(x2, a2, b2):
    """x2: (rows, width); a2, b2: (1, width) f32."""
    rows, width = x2.shape

    if rows <= _MAX_TILE_ROWS:
        tile_rows = rows                  # full-dim block (allowed by tiling rule)
        grid = (1,)
    else:
        tile_rows = _MAX_TILE_ROWS        # multiple of 8; partial last block OK
        grid = (pl.cdiv(rows, tile_rows),)

    itemsize = jnp.dtype(x2.dtype).itemsize
    cost = pl.CostEstimate(
        flops=3 * rows * width,
        transcendentals=rows * width,
        bytes_accessed=2 * rows * width * itemsize + 2 * width * 4,
    )

    return pl.pallas_call(
        gaussian_membership_kernel,
        out_shape=jax.ShapeDtypeStruct((rows, width), x2.dtype),
        grid=grid,
        in_specs=[
            pl.BlockSpec((tile_rows, width), lambda i: (i, 0)),
            pl.BlockSpec((1, width), lambda i: (0, 0)),
            pl.BlockSpec((1, width), lambda i: (0, 0)),
        ],
        out_specs=pl.BlockSpec((tile_rows, width), lambda i: (i, 0)),
        compiler_params=pltpu.CompilerParams(
            dimension_semantics=("parallel",),
        ),
        cost_estimate=cost,
    )(x2, a2, b2)


def gaussian_membership(x, a, b):
    """x: (N, D); a, b: (D,) -> (N, D) in x.dtype."""
    n, d = x.shape
    a_f = a.astype(jnp.float32)
    b_f = b.astype(jnp.float32)

    if (d % _LANE != 0) and (_LANE % d == 0) and ((n * d) % _LANE == 0):
        # Lane-dense path: pack 128/d consecutive rows' worth of columns per lane row.
        reps = _LANE // d
        rows = (n * d) // _LANE
        x2 = x.reshape(rows, _LANE)
        a2 = jnp.tile(a_f, reps).reshape(1, _LANE)
        b2 = jnp.tile(b_f, reps).reshape(1, _LANE)
        out = _gm_call(x2, a2, b2)
        return out.reshape(n, d)

    # Fallback: native (N, D) layout (already lane-dense if D % 128 == 0).
    a2 = a_f.reshape(1, d)
    b2 = b_f.reshape(1, d)
    return _gm_call(x, a2, b2)


def _reference(x, a, b):
    return jnp.exp(
        -(x.astype(jnp.float32) - a) ** 2 / (2.0 * jnp.maximum(b, 1e-8) ** 2)
    )


if __name__ == "__main__":
    key = jax.random.PRNGKey(0)
    k_x, k_a, k_b, k_x2, k_a2, k_b2 = jax.random.split(key, 6)

    # Small shapes consistent with the module's (N x input_dim) input.
    N, input_dim = 8, 32

    # Parameter init mirroring the module: a = randn(D); b = abs(randn(D)).
    a = jax.random.normal(k_a, (input_dim,), dtype=jnp.float32)
    b = jnp.abs(jax.random.normal(k_b, (input_dim,), dtype=jnp.float32))
    x = jax.random.normal(k_x, (N, input_dim), dtype=jnp.float32)

    out = jax.block_until_ready(gaussian_membership(x, a, b))
    ref = _reference(x, a, b)
    assert out.shape == (N, input_dim)
    assert jnp.allclose(out, ref, atol=1e-5, rtol=1e-5)

    # Exercise the fallback (non-lane-dense) path with a width that does not
    # divide 128.
    N2, D2 = 16, 48
    a2 = jax.random.normal(k_a2, (D2,), dtype=jnp.float32)
    b2 = jnp.abs(jax.random.normal(k_b2, (D2,), dtype=jnp.float32))
    x2 = jax.random.normal(k_x2, (N2, D2), dtype=jnp.float32)

    out2 = jax.block_until_ready(gaussian_membership(x2, a2, b2))
    ref2 = _reference(x2, a2, b2)
    assert out2.shape == (N2, D2)
    assert jnp.allclose(out2, ref2, atol=1e-5, rtol=1e-5)

    print("KERNEL_OK")
</pallas_src>

<mosaic_0001>
module attributes {stable_mosaic.version = 11 : i64} {
  func.func @gaussian_membership_kernel(%arg0: i32, %arg1: memref<2x128xf32, #tpu.memory_space<vmem>>, %arg2: memref<1x128xf32, #tpu.memory_space<vmem>>, %arg3: memref<1x128xf32, #tpu.memory_space<vmem>>, %arg4: memref<2x128xf32, #tpu.memory_space<vmem>>) attributes {dimension_semantics = [#tpu.dimension_semantics<parallel>], iteration_bounds = array<i64: 1>, scalar_prefetch = 0 : i64, scratch_operands = 0 : i64, tpu.core_type = #tpu.core_type<tc>, window_params = [{transform_indices = @transform_0, window_bounds = array<i64: 2, 128>}, {pipeline_mode = #tpu.pipeline_mode<synchronous>, transform_indices = @transform_1, window_bounds = array<i64: 1, 128>}, {pipeline_mode = #tpu.pipeline_mode<synchronous>, transform_indices = @transform_2, window_bounds = array<i64: 1, 128>}, {transform_indices = @transform_3, window_bounds = array<i64: 2, 128>}]} {
    %c0 = arith.constant 0 : index
    %c0_0 = arith.constant 0 : index
    %0 = vector.load %arg1[%c0, %c0_0] : memref<2x128xf32, #tpu.memory_space<vmem>>, vector<2x128xf32>
    %c0_1 = arith.constant 0 : index
    %c0_2 = arith.constant 0 : index
    %1 = vector.load %arg2[%c0_1, %c0_2] : memref<1x128xf32, #tpu.memory_space<vmem>>, vector<1x128xf32>
    %c0_3 = arith.constant 0 : index
    %c0_4 = arith.constant 0 : index
    %2 = vector.load %arg3[%c0_3, %c0_4] : memref<1x128xf32, #tpu.memory_space<vmem>>, vector<1x128xf32>
    %cst = arith.constant 9.99999993E-9 : f32
    %3 = vector.broadcast %cst : f32 to vector<1x128xf32>
    %4 = arith.maximumf %2, %3 : vector<1x128xf32>
    %5 = arith.mulf %4, %4 : vector<1x128xf32>
    %cst_5 = arith.constant -5.000000e-01 : f32
    %6 = vector.broadcast %cst_5 : f32 to vector<1x128xf32>
    %7 = arith.divf %6, %5 : vector<1x128xf32>
    %8 = vector.broadcast %1 : vector<1x128xf32> to vector<2x128xf32>
    %9 = arith.subf %0, %8 : vector<2x128xf32>
    %10 = arith.mulf %9, %9 : vector<2x128xf32>
    %11 = vector.broadcast %7 : vector<1x128xf32> to vector<2x128xf32>
    %12 = arith.mulf %10, %11 : vector<2x128xf32>
    %13 = math.exp %12 : vector<2x128xf32>
    %c0_6 = arith.constant 0 : index
    %c0_7 = arith.constant 0 : index
    %14 = vector.load %arg4[%c0_6, %c0_7] : memref<2x128xf32, #tpu.memory_space<vmem>>, vector<2x128xf32>
    tpu.vector_store %arg4[%c0_6, %c0_7], %13 {strides = array<i32>} : memref<2x128xf32, #tpu.memory_space<vmem>>, vector<2x128xf32>,
    return
  }
  func.func @transform_0(%arg0: i32) -> (i32, i32) {
    %c0_i32 = arith.constant 0 : i32
    %c0_i32_0 = arith.constant 0 : i32
    return %arg0, %c0_i32 : i32, i32
  }
  func.func @transform_1(%arg0: i32) -> (i32, i32) {
    %c0_i32 = arith.constant 0 : i32
    %c0_i32_0 = arith.constant 0 : i32
    %c0_i32_1 = arith.constant 0 : i32
    return %c0_i32, %c0_i32_0 : i32, i32
  }
  func.func @transform_2(%arg0: i32) -> (i32, i32) {
    %c0_i32 = arith.constant 0 : i32
    %c0_i32_0 = arith.constant 0 : i32
    %c0_i32_1 = arith.constant 0 : i32
    return %c0_i32, %c0_i32_0 : i32, i32
  }
  func.func @transform_3(%arg0: i32) -> (i32, i32) {
    %c0_i32 = arith.constant 0 : i32
    %c0_i32_0 = arith.constant 0 : i32
    return %arg0, %c0_i32 : i32, i32
  }
}

</mosaic_0001>

<bundles_post_ra>
// kernel: tpu_custom_call.1
= control target key start
LH: loop header
LB: loop body
LE: loop exit
PB: predicated region body
PF: predicated region fallthrough
CT: control target
= control target key end

     0   :  { %8 = vsyncpa [#allocation3], 0  ;;  %s214_s0 = inlined_call_operand.hbm [shape: f32[2,128], index: 0, kind: input, shape index: {}]   ;;  %s215_s1 = inlined_call_operand.hbm [shape: f32[1,128], index: 1, kind: input, shape index: {}]   ;;  %s216_s2 = inlined_call_operand.vmem [shape: f32[1,128], index: 2, kind: input, shape index: {}]   ;;  %s217_s3 = inlined_call_operand.hbm [shape: f32[2,128], index: 3, kind: output, shape index: {}]  }
   0x1   :  { %9 = vsyncpa [#allocation6], 0 }
   0x2   :  { %10 = vsyncpa [#allocation4], 0  ;;  %s16_s14 = sshll.u32 %s214_s0, 4  ;;  %s179_s15 = smov [#allocation2]   ;;  %s17_s14 = int_to_ptr.hbm [resolvable:$true] %s16_s14 }
   0x3   :  { %s18_s16 = sshll.u32 %s179_s15, 4  ;;  %s27_s19 = sshll.u32 %s215_s1, 4  ;;  %s19_s16 = int_to_ptr.vmem [resolvable:$true] %s18_s16  ;;  %s28_s19 = int_to_ptr.hbm [resolvable:$true] %s27_s19 }
   0x4   :  { %21 = dma.hbm_to_vmem [thread:$0]  %s17_s14, 32, %s19_s16, [#allocation3]  }
   0x5   :  { %s180_s20 = smov [#allocation5]  }
   0x6   :  { %s29_s21 = sshll.u32 %s180_s20, 4  ;;  %s30_s21 = int_to_ptr.vmem [resolvable:$true] %s29_s21 }
   0x7   :  { %32 = dma.hbm_to_vmem [thread:$0]  %s28_s19, 16, %s30_s21, [#allocation6]  }
   0x8   :  { %173 = dma.done.wait [#allocation3], 32  }
   0x9   :  { %174 = vsyncadd [#allocation3], 4294967264 }
   0xa   :  { %175 = dma.done.wait [#allocation6], 16  }
   0xb   :  { %176 = vsyncadd [#allocation6], 4294967280  ;;  %v45_v0 = vld [vmem:[%s216_s2] sm:$0x1]  ;;  %v96_v8 = vld [vmem:[#allocation5] ss:$0 sm:$0xff] }
   0xc   :  { %v46_v1 = vmax.f32 %v45_v0, 1e-08  ;;  %v43_v9 = vld [vmem:[#allocation2] sm:$0x3]  ;;  %s181_s1 = smov [#allocation7]   ;;  %s82_s25 = sshll.u32 %s217_s3, 4  ;;  %s83_s25 = int_to_ptr.hbm [resolvable:$true] %s82_s25 }
   0xd   :  { %v66_v13 = vsub.f32 %v43_v9, %v96_v8  ;;  %s80_s2 = sshll.u32 %s181_s1, 4  ;;  %s81_s2 = int_to_ptr.vmem [resolvable:$true] %s80_s2 }
   0xe   :  { %v47_v2 = vmul.f32 %v46_v1, %v46_v1 }
   0xf   :  { %v67_v17 = vmul.f32 %v66_v13, %v66_v13 }
  0x10   :  { %97 = vrcp.f32 %v47_v2  ;;  %v59_v5 = vand.u32 2147483648, %v47_v2  ;;  %vm53_vm0 = vweird.f32 %v47_v2  ;;  %v57_v7 = vand.u32 2147483647, %v47_v2 }
  0x12   :  { %v60_v11 = vor.u32 1.1754944e-38, %v59_v5  ;;  %vm58_vm3 = vcmp.eq.f32.partialorder %v57_v7, 8.507059e+37 }
  0x16   :  { %v98_v3 = vpop.eup %97 }
  0x17   :  { %v49_v4 = vmul.f32 %v98_v3, %v47_v2  ;;  %vm54_vm1 = vweird.f32 %v98_v3 }
  0x18   :  { %vm55_vm2 = vmor %vm53_vm0, %vm54_vm1 }
  0x19   :  { %v50_v6 = vsub.f32 1.0, %v49_v4 }
  0x1b   :  { %v51_v10 = vmul.f32 %v98_v3, %v50_v6 }
  0x1d   :  { %v52_v12 = vadd.f32 %v98_v3, %v51_v10 }
  0x1f   :  { %v56_v14 = vsel %vm55_vm2, %v98_v3, %v52_v12 }
  0x20   :  { %v61_v15 = vsel %vm58_vm3, %v60_v11, %v56_v14 }
  0x21   :  { %v62_v16 = vmul.f32 -0.5, %v61_v15 }
  0x23   :  { %v69_v18 = vperm.slane %v62_v16, 0 }
  0x25   :  { %v71_v19 = vmul.f32 %v69_v18, %v67_v17 }
  0x27   :  { %v72_v20 = vmul.f32 1.442695, %v71_v19 }
  0x29   :  { %99 = vpow2.f32 %v72_v20 }
  0x2f   :  { %v100_v21 = vpop.eup %99 }
  0x30   :  { %74 = vst [vmem:[#allocation7] sm:$0x3] %v100_v21 }
  0x31   :  { %85 = dma.vmem_to_hbm [thread:$0]  %s81_s2, 32, %s83_s25, [#allocation4]  }
  0x32   :  { %177 = dma.done.wait [#allocation4], 32  }
  0x33   :  { %178 = vsyncadd [#allocation4], 4294967264 }
  0x34   :  { %90 = vsyncpa [#allocation3], 1 }
  0x35   :  { %91 = vsyncpa [#allocation6], 1 }
  0x36   :  { %92 = vsyncpa [#allocation4], 1 }

</bundles_post_ra>
